<compile_context>
chip_gen: v7x
topology: tpu7x:2x2x1
jax: 0.10.0
libtpu: 0.0.40
codegen_flags: <defaults>
</compile_context>

<pallas_src>
import functools

import jax
import jax.numpy as jnp
from jax.experimental import pallas as pl
from jax.experimental.pallas import tpu as pltpu

_LANES = 128                    # minor (lane) dim of the zero-copy 2-D view
_TARGET_GRID_STEPS = 8          # >= 4-8 steps: megacore sharding + pipelining
_MAX_BLOCK_BYTES = 4 << 20      # 4 MiB blocks; 2 in + 2 out buffers = 16 MiB
_MIN_PALLAS_ELEMS = 1 << 18     # below ~256K elements fused XLA is as good


def _round_up(x, m):
    return -(-x // m) * m


def _envelope_kernel(x_ref, o_ref, *, p, a, b, c):
    # Compute in f32 regardless of the streamed dtype (safe on v5e too).
    x = x_ref[...].astype(jnp.float32)
    inv_x = pl.reciprocal(x, approx=False)   # exact, matches the reference
    x_pow_pm1 = x ** (p - 1)                 # compile-time integer power
    poly = a + x * (b + c * x)               # Horner: a + b*x + c*x^2
    o_ref[...] = (inv_x + x_pow_pm1 * poly).astype(o_ref.dtype)


def _envelope_jax(x, p, a, b, c):
    """Pure-JAX path; XLA fuses it into one HBM-roofline elementwise op."""
    x_pow_p0 = x ** (p - 1)
    x_pow_p1 = x_pow_p0 * x
    x_pow_p2 = x_pow_p1 * x
    return 1.0 / x + a * x_pow_p0 + b * x_pow_p1 + c * x_pow_p2


def envelope(x, exponent, min_pallas_elems=_MIN_PALLAS_ELEMS):
    """Apply the Envelope polynomial elementwise to `x` of any shape."""
    p = exponent + 1
    a = -(p + 1) * (p + 2) / 2.0
    b = float(p * (p + 2))
    c = -p * (p + 1) / 2.0

    orig_shape = x.shape
    orig_dtype = x.dtype
    n = x.size

    itemsize = jnp.dtype(orig_dtype).itemsize
    sub = max(8, 32 // itemsize)          # f32 -> 8, bf16 -> 16, int8/fp8 -> 32

    # Small inputs, lane-misaligned sizes, or fewer rows than one packed tile:
    # use the fused XLA expression (same HBM traffic, no launch overhead, no
    # pad/slice copies).
    if (n < min_pallas_elems) or (n % _LANES != 0) or (n // _LANES) < sub:
        return _envelope_jax(x, p, a, b, c)

    rows = n // _LANES
    x2d = x.reshape(rows, _LANES)          # contiguous -> zero-copy view

    # Block sizing: aim for >= _TARGET_GRID_STEPS grid steps, round rows up to
    # the dtype's sublane-packing multiple, cap the block at 4 MiB.
    max_block_rows = max(sub, _MAX_BLOCK_BYTES // (_LANES * itemsize))
    block_rows = _round_up(pl.cdiv(rows, _TARGET_GRID_STEPS), sub)
    block_rows = max(sub, min(block_rows, max_block_rows))
    num_blocks = pl.cdiv(rows, block_rows)  # ragged last block handled by Pallas

    kernel = functools.partial(_envelope_kernel, p=p, a=a, b=b, c=c)

    out2d = pl.pallas_call(
        kernel,
        out_shape=jax.ShapeDtypeStruct((rows, _LANES), orig_dtype),
        grid_spec=pl.GridSpec(
            grid=(num_blocks,),
            in_specs=[pl.BlockSpec((block_rows, _LANES), lambda i: (i, 0))],
            out_specs=pl.BlockSpec((block_rows, _LANES), lambda i: (i, 0)),
        ),
        compiler_params=pltpu.CompilerParams(
            dimension_semantics=("parallel",),   # megacore sharding on v7x
            vmem_limit_bytes=32 << 20,           # headroom on every generation
        ),
    )(x2d)

    return out2d.reshape(orig_shape)


def envelope_ref(x, exponent):
    """Pure-JAX reference matching the PyTorch forward exactly."""
    p = exponent + 1
    a = -(p + 1) * (p + 2) / 2.0
    b = float(p * (p + 2))
    c = -p * (p + 1) / 2.0
    x_pow_p0 = x ** (p - 1)
    x_pow_p1 = x_pow_p0 * x
    x_pow_p2 = x_pow_p1 * x
    return 1.0 / x + a * x_pow_p0 + b * x_pow_p1 + c * x_pow_p2


if __name__ == "__main__":
    key = jax.random.PRNGKey(0)
    exponent = 5  # typical DimeNet envelope exponent -> p = 6
    k1, k2, k3, k4 = jax.random.split(key, 4)

    # 1) Small lane-aligned input, Pallas path forced (min_pallas_elems=0):
    #    rows=256 -> block_rows=32 -> grid=(8,), exercises the actual kernel.
    x_small = jax.random.uniform(k1, (256, 128), dtype=jnp.float32,
                                 minval=0.05, maxval=1.0)
    out_small = jax.block_until_ready(envelope(x_small, exponent,
                                               min_pallas_elems=0))
    ref_small = envelope_ref(x_small, exponent)
    assert out_small.shape == ref_small.shape
    assert out_small.dtype == ref_small.dtype
    assert jnp.allclose(out_small, ref_small, rtol=1e-5, atol=1e-5), (
        float(jnp.max(jnp.abs(out_small - ref_small))))

    # 2) Medium lane-aligned input, Pallas path taken by default threshold.
    x_med = jax.random.uniform(k2, (2048, 128), dtype=jnp.float32,
                               minval=0.05, maxval=1.0)
    out_med = jax.block_until_ready(envelope(x_med, exponent))
    ref_med = envelope_ref(x_med, exponent)
    assert jnp.allclose(out_med, ref_med, rtol=1e-5, atol=1e-5)

    # 3) Tiny 2-D shape of scaled edge distances -> fused-XLA fallback.
    x_tiny = jax.random.uniform(k3, (16, 128), dtype=jnp.float32,
                                minval=0.05, maxval=1.0)
    out_tiny = jax.block_until_ready(envelope(x_tiny, exponent))
    ref_tiny = envelope_ref(x_tiny, exponent)
    assert jnp.allclose(out_tiny, ref_tiny, rtol=1e-5, atol=1e-5)

    # 4) Ragged 1-D shape (non-multiple of 128) -> fallback path.
    x_rag = jax.random.uniform(k4, (100,), dtype=jnp.float32,
                               minval=0.05, maxval=1.0)
    out_rag = jax.block_until_ready(envelope(x_rag, exponent))
    ref_rag = envelope_ref(x_rag, exponent)
    assert out_rag.shape == ref_rag.shape
    assert jnp.allclose(out_rag, ref_rag, rtol=1e-5, atol=1e-5)

    print("KERNEL_OK")
</pallas_src>

<mosaic_0001>
module attributes {stable_mosaic.version = 11 : i64} {
  func.func @_envelope_kernel(%arg0: i32, %arg1: memref<32x128xf32, #tpu.memory_space<vmem>>, %arg2: memref<32x128xf32, #tpu.memory_space<vmem>>) attributes {dimension_semantics = [#tpu.dimension_semantics<parallel>], iteration_bounds = array<i64: 8>, scalar_prefetch = 0 : i64, scratch_operands = 0 : i64, tpu.core_type = #tpu.core_type<tc>, window_params = [{transform_indices = @transform_0, window_bounds = array<i64: 32, 128>}, {transform_indices = @transform_1, window_bounds = array<i64: 32, 128>}]} {
    %c0 = arith.constant 0 : index
    %c0_0 = arith.constant 0 : index
    %0 = vector.load %arg1[%c0, %c0_0] : memref<32x128xf32, #tpu.memory_space<vmem>>, vector<32x128xf32>
    %1 = tpu.reciprocal %0 : vector<32x128xf32> -> vector<32x128xf32>
    %2 = arith.mulf %0, %0 : vector<32x128xf32>
    %3 = arith.mulf %2, %2 : vector<32x128xf32>
    %4 = arith.mulf %0, %3 : vector<32x128xf32>
    %cst = arith.constant -2.100000e+01 : f32
    %5 = vector.broadcast %cst : f32 to vector<32x128xf32>
    %6 = arith.mulf %5, %0 : vector<32x128xf32>
    %cst_1 = arith.constant 4.800000e+01 : f32
    %7 = vector.broadcast %cst_1 : f32 to vector<32x128xf32>
    %8 = arith.addf %7, %6 : vector<32x128xf32>
    %9 = arith.mulf %0, %8 : vector<32x128xf32>
    %cst_2 = arith.constant -2.800000e+01 : f32
    %10 = vector.broadcast %cst_2 : f32 to vector<32x128xf32>
    %11 = arith.addf %10, %9 : vector<32x128xf32>
    %12 = arith.mulf %4, %11 : vector<32x128xf32>
    %13 = arith.addf %1, %12 : vector<32x128xf32>
    %c0_3 = arith.constant 0 : index
    %c0_4 = arith.constant 0 : index
    %14 = vector.load %arg2[%c0_3, %c0_4] : memref<32x128xf32, #tpu.memory_space<vmem>>, vector<32x128xf32>
    tpu.vector_store %arg2[%c0_3, %c0_4], %13 {strides = array<i32>} : memref<32x128xf32, #tpu.memory_space<vmem>>, vector<32x128xf32>,
    return
  }
  func.func @transform_0(%arg0: i32) -> (i32, i32) {
    %c0_i32 = arith.constant 0 : i32
    %c0_i32_0 = arith.constant 0 : i32
    return %arg0, %c0_i32 : i32, i32
  }
  func.func @transform_1(%arg0: i32) -> (i32, i32) {
    %c0_i32 = arith.constant 0 : i32
    %c0_i32_0 = arith.constant 0 : i32
    return %arg0, %c0_i32 : i32, i32
  }
}

</mosaic_0001>

<bundles_post_ra>
// kernel: tpu_custom_call.1
= control target key start
LH: loop header
LB: loop body
LE: loop exit
PB: predicated region body
PF: predicated region fallthrough
CT: control target
= control target key end

     0   :  { %6 = vsyncpa [#allocation3], 0  ;;  %s624_s0 = inlined_call_operand.hbm [shape: f32[256,128], index: 0, kind: input, shape index: {}]   ;;  %s625_s1 = inlined_call_operand.hbm [shape: f32[256,128], index: 1, kind: output, shape index: {}]  }
   0x1   :  { %8 = vsyncpa [#allocation3 + $0x1], 0 }
   0x2   :  { %9 = vsyncpa [#allocation4], 0 }
   0x3   :  { %11 = vsyncpa [#allocation4 + $0x1], 0  ;;  %s460_s6 = smov 0   ;;  %s462_s7 = smov 0  }
   0x4   :  { %s464_s8 = smov 0   ;;  %s466_s9 = smov 0  }
   0x5 LB: > { %s481_s10 = sadd.s32 4294967295, %s442_s9   ;;  %s272_s11 = sadd.s32 4294967294, %s442_s9   ;;  %s442_s9 = sphi %s466_s9, %s637_s9   ;;  %s438_s8 = sphi %s464_s8, %s636_s8   ;;  %s434_s7 = sphi %s462_s7, %s635_s7   ;;  %s430_s6 = sphi %s460_s6, %s634_s6  }
   0x6   : > { %s485_s12 = sadd.s32 1, %s442_s9   ;;  %s24_s13 = sadd.s32 1, %s438_s8 }
   0x7   : > { %s21_s14 = ssub.s32 %s442_s9, %s485_s12  ;;  %p31_p0 = scmp.ne.s32.totalorder %s438_s8, %s434_s7 }
   0x8   : > { %p22_p1 = scmp.eq.s32.totalorder %s21_s14, 0  ;;  %p32_p2 = scmp.eq.s32.totalorder %s442_s9, 0 }
   0x9   : > { %p37_p3 = scmp.ne.s32.totalorder %s434_s7, %s430_s6  ;;  %p38_p4 = scmp.eq.s32.totalorder %s481_s10, 0 }
   0xa   : > { %s497_s15 = scalar_select %p22_p1, %s438_s8, %s24_s13  }
   0xb   : > { %p499_p5 = por %p32_p2, %p31_p0  ;;  %p503_p6 = por %p38_p4, %p37_p3 }
   0xc   : > { %p61_p7 = scmp.eq.s32.totalorder %s481_s10, 7  ;;  %p67_p8 = scmp.eq.s32.totalorder %s272_s11, 7 }
   0xd   : > { %p300_p9 = scmp.lt.s32.totalorder %s442_s9, 8  ;;  %s87_s20 = sand.u32 1, %s438_s8  }
   0xe   : > { %p509_p10 = por %p61_p7, %p31_p0  ;;  %p513_p11 = por %p67_p8, %p37_p3 }
   0xf   : > { %s286_s21 = sshll.u32 %s442_s9, 9  ;;  %s275_s22 = sshll.u32 %s87_s20, 5 }
  0x10   : > { %s629_s18 = scalar_select %p509_p10, 1, 0 }
  0x11   : > { %s630_s19 = scalar_select %p513_p11, 1, 0 }
  0x12   : > { %s522_s25 = scalar_lea.hbm %s624_s0, %s286_s21  ;;  %s91_s26 = scalar_lea.vmem [#allocation2], %s275_s22 }
  0x13   : > { %s98_s27 = sshll.u32 %s91_s26, 4  ;;  %p526_p12 = pnand %p300_p9, %p499_p5  ;;  %s530_s27 = int_to_ptr.vmem [resolvable:$true] %s98_s27 }
  0x14   : > { %s532_s29 = scalar_lea.sflag [#allocation3], %s87_s20  ;;  %s346_s30 = scalar_lea.hbm %s522_s25, 512 }
  0x15   : > { %p347_p13 = scmp.ne.s32.totalorder %s522_s25, %s346_s30  ;;  %p348_p0 = pneg %p526_p12 }
  0x16   : > { %s351_s4 = scalar_lea.hbm %s624_s0, 4096  ;;  %p352_p3 = scmp.lt.u32.totalorder %s522_s25, %s624_s0 }
  0x17   : > { %p349_p1 = pnand %p348_p0, %p347_p13  ;;  %p353_p4 = scmp.lt.u32.totalorder %s351_s4, %s346_s30 }
  0x18   : > { %p355_p7 = scmp.lt.u32.totalorder %s346_s30, %s522_s25 }
  0x19   : > { %p350_p2 = pneg %p349_p1  ;;  %p354_p5 = por %p353_p4, %p352_p3 }
  0x1b   : > { %p356_p8 = por %p355_p7, %p354_p5 }
  0x1d   : > { %p357_p9 = pnand %p356_p8, %p350_p2 }
  0x1f   : > { %360 = shalt.err (!%p357_p9)
}
  0x20   : > { %s361_s13 = scalar_lea.vmem %s530_s27, 512  ;;  %s444_s14 = smov [#allocation2]  }
  0x21   : > { %p362_p13 = scmp.ne.s32.totalorder %s530_s27, %s361_s13  ;;  %s366_s16 = sshll.u32 %s444_s14, 4  ;;  %s367_s16 = int_to_ptr.vmem [resolvable:$false] %s366_s16 }
  0x22   : > { %s368_s20 = scalar_lea.vmem %s367_s16, 1024  ;;  %p369_p10 = scmp.lt.s32.totalorder %s530_s27, %s367_s16 }
  0x23   : > { %p364_p1 = pnand %p362_p13, %p348_p0  ;;  %p370_p3 = scmp.lt.s32.totalorder %s368_s20, %s361_s13 }
  0x25   : > { %p365_p11 = pneg %p364_p1  ;;  %p371_p4 = por %p370_p3, %p369_p10 }
  0x27   : > { %p372_p5 = pnand %p371_p4, %p365_p11 }
  0x29   : > { %375 = shalt.err (!%p372_p5)
}
  0x2a   : > { %s445_s21 = smov 128   ;;  %s446_s22 = smov 8  }
  0x2b   : > { %295 = dma.hbm_to_vmem [thread:$0]  (!%p526_p12), %s522_s25, 512, %s530_s27, %s532_s29, %s445_s21, %s445_s21, %s446_s22  }
  0x2c   : > { %p278_p0 = scmp.ge.s32.totalorder %s442_s9, 1  ;;  %p106_p2 = scmp.lt.s32.totalorder %s442_s9, 9 }
  0x2e   : > { %p107_p7 = pnand %p278_p0, %p106_p2 }
  0x2f   : > { %s563_s23 = sand.u32 (!%p107_p7), 1, %s434_s7  }
  0x30   : > { %110 = sbr.rel (%p107_p7) target bundleno = 89 (0x59), region = 24  ;;  %s279_s24 = sshll.u32 (!%p107_p7), %s563_s23, 5 }
  0x31   : > { %s113_s26 = scalar_lea.sflag (!%p107_p7), [#allocation3], %s563_s23  ;;  %s116_s30 = scalar_lea.vmem (!%p107_p7), [#allocation2], %s279_s24 }
  0x37   : > { %421 = dma.done.wait (%p503_p6), %s113_s26, 512  }
  0x38   : > { %423 = vsyncadd (%p503_p6), %s113_s26, 4294966784  ;;  %v137_v0 = vld [vmem:[%s116_s30] sm:$0xff]  ;;  %v138_v1 = vld [vmem:[%s116_s30 + $0x8] sm:$0xff]  ;;  %s134_s17 = scalar_lea.vmem [#allocation5], %s279_s24  ;;  %s287_s27 = sshll.u32 %s481_s10, 9 }
  0x39   : > { %v139_v2 = vld [vmem:[%s116_s30 + $0x10] sm:$0xff]  ;;  %338 = vrcp.f32 %v137_v0  ;;  %v145_v3 = vmul.f32 %v137_v0, %v137_v0  ;;  %v157_v4 = vmul.f32 -21.0, %v137_v0  ;;  %v146_v5 = vmul.f32 %v138_v1, %v138_v1  ;;  %v140_v6 = vld [vmem:[%s116_s30 + $0x18] sm:$0xff]  ;;  %s199_s25 = sshll.u32 %s134_s17, 4  ;;  %s581_s2 = scalar_lea.hbm %s625_s1, %s287_s27  ;;  %s576_s25 = int_to_ptr.vmem [resolvable:$true] %s199_s25 }
  0x3a   : > { %340 = vrcp.f32 %v138_v1  ;;  %v158_v7 = vmul.f32 -21.0, %v138_v1  ;;  %v147_v8 = vmul.f32 %v139_v2, %v139_v2  ;;  %v159_v9 = vmul.f32 -21.0, %v139_v2  ;;  %s186_s10 = scalar_lea.sflag [#allocation4], %s563_s23  ;;  %s376_s3 = scalar_lea.vmem %s576_s25, 512 }
  0x3b   : > { %v149_v10 = vmul.f32 %v145_v3, %v145_v3  ;;  %v161_v11 = vadd.f32 48.0, %v157_v4  ;;  %v150_v12 = vmul.f32 %v146_v5, %v146_v5  ;;  %342 = vrcp.f32 %v139_v2  ;;  %p377_p6 = scmp.ne.s32.totalorder %s576_s25, %s376_s3  ;;  %p632_p10 = scmp.ne.s32.totalorder %s629_s18, 0 }
  0x3c   : > { %v162_v13 = vadd.f32 48.0, %v158_v7  ;;  %v151_v14 = vmul.f32 %v147_v8, %v147_v8  ;;  %v163_v15 = vadd.f32 48.0, %v159_v9  ;;  %344 = vrcp.f32 %v140_v6  ;;  %s447_s4 = smov [#allocation5]  }
  0x3d   : > { %v153_v16 = vmul.f32 %v149_v10, %v137_v0  ;;  %v165_v17 = vmul.f32 %v161_v11, %v137_v0  ;;  %v154_v18 = vmul.f32 %v150_v12, %v138_v1  ;;  %v148_v19 = vmul.f32 %v140_v6, %v140_v6  ;;  %p378_p11 = pnand %p377_p6, %p632_p10  ;;  %s380_s5 = sshll.u32 %s447_s4, 4  ;;  %s381_s5 = int_to_ptr.vmem [resolvable:$false] %s380_s5 }
  0x3e   : > { %v166_v20 = vmul.f32 %v162_v13, %v138_v1  ;;  %v155_v21 = vmul.f32 %v151_v14, %v139_v2  ;;  %v167_v22 = vmul.f32 %v163_v15, %v139_v2  ;;  %v160_v23 = vmul.f32 -21.0, %v140_v6  ;;  %s382_s11 = scalar_lea.vmem %s381_s5, 1024  ;;  %p383_p8 = scmp.lt.s32.totalorder %s576_s25, %s381_s5 }
  0x3f   : > { %v169_v24 = vadd.f32 -28.0, %v165_v17  ;;  %v152_v25 = vmul.f32 %v148_v19, %v148_v19  ;;  %p379_p12 = pneg %p378_p11  ;;  %p384_p9 = scmp.lt.s32.totalorder %s382_s11, %s376_s3 }
  0x40   : > { %v170_v26 = vadd.f32 -28.0, %v166_v20  ;;  %v171_v27 = vadd.f32 -28.0, %v167_v22  ;;  %v164_v28 = vadd.f32 48.0, %v160_v23 }
  0x41   : > { %v173_v29 = vmul.f32 %v169_v24, %v153_v16  ;;  %v156_v32 = vmul.f32 %v152_v25, %v140_v6  ;;  %p385_p13 = por %p384_p9, %p383_p8 }
  0x42   : > { %v174_v30 = vmul.f32 %v170_v26, %v154_v18  ;;  %v175_v31 = vmul.f32 %v171_v27, %v155_v21  ;;  %v168_v33 = vmul.f32 %v164_v28, %v140_v6 }
  0x43   : > { %v339_v34 = vpop.eup %338  ;;  %p386_p1 = pnand %p385_p13, %p379_p12 }
  0x44   : > { %v341_v35 = vpop.eup %340  ;;  %v177_v36 = vadd.f32 %v339_v34, %v173_v29  ;;  %v172_v37 = vadd.f32 -28.0, %v168_v33 }
  0x45   : > { %v343_v38 = vpop.eup %342  ;;  %v178_v39 = vadd.f32 %v341_v35, %v174_v30 }
  0x46   : > { %v345_v40 = vpop.eup %344  ;;  %181 = vst [vmem:[%s134_s17] sm:$0xff] %v177_v36  ;;  %v179_v41 = vadd.f32 %v343_v38, %v175_v31  ;;  %v176_v42 = vmul.f32 %v172_v37, %v156_v32 }
  0x47   : > { %182 = vst [vmem:[%s134_s17 + $0x8] sm:$0xff] %v178_v39 }
  0x48   : > { %183 = vst [vmem:[%s134_s17 + $0x10] sm:$0xff] %v179_v41  ;;  %v180_v43 = vadd.f32 %v345_v40, %v176_v42 }
  0x4a   : > { %184 = vst [vmem:[%s134_s17 + $0x18] sm:$0xff] %v180_v43 }
  0x4b   : > { %389 = shalt.err (!%p386_p1)
}
  0x4c   : > { %s390_s13 = scalar_lea.hbm %s581_s2, 512  ;;  %s394_s20 = scalar_lea.hbm %s625_s1, 4096 }
  0x4d   : > { %p391_p3 = scmp.ne.s32.totalorder %s581_s2, %s390_s13  ;;  %p395_p0 = scmp.lt.u32.totalorder %s581_s2, %s625_s1 }
  0x4e   : > { %p396_p2 = scmp.lt.u32.totalorder %s394_s20, %s390_s13  ;;  %p398_p6 = scmp.lt.u32.totalorder %s390_s13, %s581_s2 }
  0x4f   : > { %p392_p4 = pnand %p391_p3, %p632_p10 }
  0x50   : > { %p397_p7 = por %p396_p2, %p395_p0 }
  0x51   : > { %p393_p5 = pneg %p392_p4 }
  0x52   : > { %p399_p11 = por %p398_p6, %p397_p7 }
  0x54   : > { %p400_p12 = pnand %p399_p11, %p393_p5 }
  0x56   : > { %403 = shalt.err (!%p400_p12)
}
  0x57   : > { %s448_s24 = smov 128   ;;  %s449_s26 = smov 8  }
  0x58   : > { %290 = dma.vmem_to_hbm [thread:$0]  (%p632_p10), %s576_s25, 512, %s581_s2, %s186_s10, %s448_s24, %s448_s24, %s449_s26  }
  0x59 PF: > { %p301_p8 = scmp.ge.s32.totalorder %s442_s9, 2  ;;  %s214_s30 = sand.u32 1, %s430_s6  }
  0x5a   : > { %p633_p9 = scmp.ne.s32.totalorder %s630_s19, 0  ;;  %s215_s17 = scalar_lea.sflag [#allocation4], %s214_s30 }
  0x5c   : > { %p297_p13 = pnand %p301_p8, %p633_p9 }
  0x5e   : > { %425 = dma.done.wait (!%p297_p13), %s215_s17, 512  }
  0x5f   : > { %427 = vsyncadd (!%p297_p13), %s215_s17, 4294966784  ;;  %p14_p1 = scmp.ge.s32.totalorder %s485_s12, 10   ;;  %s634_s6 = smov %s434_s7 }
  0x60   : > { %s635_s7 = smov %s438_s8  ;;  %s636_s8 = smov %s497_s15 }
  0x61   : > { %s637_s9 = smov %s485_s12  ;;  %16 = sbr.rel (!%p14_p1) target bundleno = 5 (0x5), region = 69 }
  0x68   :  { %220 = vsyncpa [#allocation3], 1 }
  0x69   :  { %222 = vsyncpa [#allocation3 + $0x1], 1 }
  0x6a   :  { %223 = vsyncpa [#allocation4], 1 }
  0x6b   :  { %225 = vsyncpa [#allocation4 + $0x1], 1 }

</bundles_post_ra>
